<compile_context>
chip_gen: v7x
topology: tpu7x:2x2x1
jax: 0.10.0
libtpu: 0.0.40
codegen_flags: <defaults>
</compile_context>

<pallas_src>
import functools
import math

import jax
import jax.numpy as jnp
from jax import lax
from jax.experimental import pallas as pl
from jax.experimental.pallas import tpu as pltpu


def _round_up(a, b):
    return (a + b - 1) // b * b


def _matmul_bias_gelu_kernel(x_ref, w_ref, b_ref, o_ref):
    # x_ref: (TM, KCp)   im2col activation tile (lane = KCp, multiple of 128)
    # w_ref: (KCp, COp)  packed conv weights   (COp multiple of 128)
    # b_ref: (1, COp)    bias (zero-padded)
    # o_ref: (TM, COp)   output tile (lane-dense, unmasked stores)
    acc = jnp.dot(x_ref[...], w_ref[...], preferred_element_type=jnp.float32)
    acc = acc + b_ref[...].astype(jnp.float32)

    # exact GELU (matches torch.nn.GELU() default, approximate='none')
    inv_sqrt2 = jnp.float32(1.0 / math.sqrt(2.0))
    y = 0.5 * acc * (1.0 + lax.erf(acc * inv_sqrt2))

    o_ref[...] = y.astype(o_ref.dtype)


def basic_conv(x_nchw, weight_oihw, bias, *, stride=1):
    """BasicConv forward: Conv2d(pad=k//2, stride) + bias + GELU.

    x_nchw:      (N, Cin, H, W)   -- PyTorch convention
    weight_oihw: (Cout, Cin, K, K)
    bias:        (Cout,)
    returns      (N, Cout, Ho, Wo)
    """
    n, cin, h, w = x_nchw.shape
    cout, _, k, _ = weight_oihw.shape
    pad = k // 2

    ho = (h + 2 * pad - k) // stride + 1
    wo = (w + 2 * pad - k) // stride + 1

    # ---- wrapper glue: im2col to a lane-dense slab ------------------------
    # TODO(synk): this layout/pad glue is still plain XLA (extra HBM passes);
    # for production image sizes it should be folded into the kernel via
    # row-tiled BlockSpecs with in-kernel halo handling.
    x_nhwc = jnp.transpose(x_nchw, (0, 2, 3, 1))                  # (N,H,W,Cin)
    x_pad = jnp.pad(x_nhwc, ((0, 0), (pad, pad), (pad, pad), (0, 0)))

    cols = []
    for kh in range(k):
        for kw in range(k):
            cols.append(
                x_pad[:, kh:kh + (ho - 1) * stride + 1:stride,
                      kw:kw + (wo - 1) * stride + 1:stride, :])   # (N,Ho,Wo,Cin)
    patches = jnp.concatenate(cols, axis=-1)                      # (N,Ho,Wo,K*K*Cin)

    kc = k * k * cin
    kc_pad = _round_up(kc, 128)
    co_pad = _round_up(cout, 128)

    m = n * ho * wo
    if m >= 128:
        tm = 128
    else:
        tm = _round_up(max(m, 8), 8)
    m_pad = _round_up(m, tm)

    patches = patches.reshape(m, kc)
    patches = jnp.pad(patches, ((0, m_pad - m), (0, kc_pad - kc)))

    # weight: OIHW -> HWIO -> (K*K*Cin, Cout), feature ordering (kh, kw, cin)
    # matches the im2col concatenation order above.
    w_mat = jnp.transpose(weight_oihw, (2, 3, 1, 0)).reshape(kc, cout)
    w_mat = jnp.pad(w_mat, ((0, kc_pad - kc), (0, co_pad - cout)))
    w_mat = w_mat.astype(x_nchw.dtype)
    b_mat = jnp.pad(bias, (0, co_pad - cout)).reshape(1, co_pad)

    grid = (m_pad // tm,)

    out_slab = pl.pallas_call(
        _matmul_bias_gelu_kernel,
        out_shape=jax.ShapeDtypeStruct((m_pad, co_pad), x_nchw.dtype),
        grid_spec=pltpu.PrefetchScalarGridSpec(
            num_scalar_prefetch=0,
            grid=grid,
            in_specs=[
                pl.BlockSpec((tm, kc_pad), lambda i: (i, 0)),
                pl.BlockSpec((kc_pad, co_pad), lambda i: (0, 0)),
                pl.BlockSpec((1, co_pad), lambda i: (0, 0)),
            ],
            out_specs=pl.BlockSpec((tm, co_pad), lambda i: (i, 0)),
        ),
        compiler_params=pltpu.CompilerParams(
            dimension_semantics=("parallel",),
            vmem_limit_bytes=32 * 1024 * 1024,
        ),
    )(patches, w_mat, b_mat)

    out = out_slab[:m, :cout].reshape(n, ho, wo, cout)
    return jnp.transpose(out, (0, 3, 1, 2))


# TODO(synk): norm=True (BatchNorm2d) and transpose=True (ConvTranspose2d)
# branches of BasicConv are not implemented; the default config is covered.


def _reference(x_nchw, weight_oihw, bias, *, stride=1):
    k = weight_oihw.shape[-1]
    pad = k // 2
    y = lax.conv_general_dilated(
        x_nchw.astype(jnp.float32),
        weight_oihw.astype(jnp.float32),
        window_strides=(stride, stride),
        padding=((pad, pad), (pad, pad)),
        dimension_numbers=("NCHW", "OIHW", "NCHW"),
    )
    y = y + bias.astype(jnp.float32)[None, :, None, None]
    return jax.nn.gelu(y, approximate=False)


if __name__ == "__main__":
    key = jax.random.PRNGKey(0)
    k_x, k_w, k_b = jax.random.split(key, 3)

    # small shapes consistent with the module: N=2, Cin=4, Cout=8, 16x16, k=3
    N, CIN, COUT, H, W, K, STRIDE = 2, 4, 8, 16, 16, 3, 1

    x = jax.random.normal(k_x, (N, CIN, H, W), dtype=jnp.float32)

    # deterministic PyTorch-like init: U(-bound, bound), bound = 1/sqrt(fan_in)
    fan_in = CIN * K * K
    bound = 1.0 / math.sqrt(fan_in)
    weight = jax.random.uniform(k_w, (COUT, CIN, K, K), jnp.float32,
                                minval=-bound, maxval=bound)
    bias = jax.random.uniform(k_b, (COUT,), jnp.float32,
                              minval=-bound, maxval=bound)

    out = basic_conv(x, weight, bias, stride=STRIDE)
    out = jax.block_until_ready(out)

    ref = _reference(x, weight, bias, stride=STRIDE)
    assert out.shape == ref.shape, (out.shape, ref.shape)
    assert jnp.allclose(out, ref, atol=1e-4, rtol=1e-4), (
        float(jnp.max(jnp.abs(out - ref))))

    print("KERNEL_OK")
</pallas_src>

<mosaic_0001>
module attributes {stable_mosaic.version = 11 : i64} {
  func.func @_matmul_bias_gelu_kernel(%arg0: i32, %arg1: memref<128x128xf32, #tpu.memory_space<vmem>>, %arg2: memref<128x128xf32, #tpu.memory_space<vmem>>, %arg3: memref<1x128xf32, #tpu.memory_space<vmem>>, %arg4: memref<128x128xf32, #tpu.memory_space<vmem>>) attributes {dimension_semantics = [#tpu.dimension_semantics<parallel>], iteration_bounds = array<i64: 4>, scalar_prefetch = 0 : i64, scratch_operands = 0 : i64, tpu.core_type = #tpu.core_type<tc>, window_params = [{transform_indices = @transform_0, window_bounds = array<i64: 128, 128>}, {pipeline_mode = #tpu.pipeline_mode<synchronous>, transform_indices = @transform_1, window_bounds = array<i64: 128, 128>}, {pipeline_mode = #tpu.pipeline_mode<synchronous>, transform_indices = @transform_2, window_bounds = array<i64: 1, 128>}, {transform_indices = @transform_3, window_bounds = array<i64: 128, 128>}]} {
    %c0 = arith.constant 0 : index
    %c0_0 = arith.constant 0 : index
    %0 = vector.load %arg1[%c0, %c0_0] : memref<128x128xf32, #tpu.memory_space<vmem>>, vector<128x128xf32>
    %c0_1 = arith.constant 0 : index
    %c0_2 = arith.constant 0 : index
    %1 = vector.load %arg2[%c0_1, %c0_2] : memref<128x128xf32, #tpu.memory_space<vmem>>, vector<128x128xf32>
    %cst = arith.constant dense<0.000000e+00> : vector<128x128xf32>
    %2 = tpu.matmul %0, %1, %cst {dimension_numbers = #tpu.dot_dimension_numbers<[1], [0], [0], [1], [0, 0, 1, 1], [], []>} : vector<128x128xf32>, vector<128x128xf32>, vector<128x128xf32> -> vector<128x128xf32>
    %c0_3 = arith.constant 0 : index
    %c0_4 = arith.constant 0 : index
    %3 = vector.load %arg3[%c0_3, %c0_4] : memref<1x128xf32, #tpu.memory_space<vmem>>, vector<1x128xf32>
    %4 = vector.broadcast %3 : vector<1x128xf32> to vector<128x128xf32>
    %5 = arith.addf %2, %4 : vector<128x128xf32>
    %cst_5 = arith.constant 5.000000e-01 : f32
    %6 = vector.broadcast %cst_5 : f32 to vector<128x128xf32>
    %7 = arith.mulf %6, %5 : vector<128x128xf32>
    %cst_6 = arith.constant 0.707106769 : f32
    %8 = vector.broadcast %cst_6 : f32 to vector<128x128xf32>
    %9 = arith.mulf %5, %8 : vector<128x128xf32>
    %10 = math.erf %9 : vector<128x128xf32>
    %cst_7 = arith.constant 1.000000e+00 : f32
    %11 = vector.broadcast %cst_7 : f32 to vector<128x128xf32>
    %12 = arith.addf %11, %10 : vector<128x128xf32>
    %13 = arith.mulf %7, %12 : vector<128x128xf32>
    %c0_8 = arith.constant 0 : index
    %c0_9 = arith.constant 0 : index
    %14 = vector.load %arg4[%c0_8, %c0_9] : memref<128x128xf32, #tpu.memory_space<vmem>>, vector<128x128xf32>
    tpu.vector_store %arg4[%c0_8, %c0_9], %13 {strides = array<i32>} : memref<128x128xf32, #tpu.memory_space<vmem>>, vector<128x128xf32>,
    return
  }
  func.func @transform_0(%arg0: i32) -> (i32, i32) {
    %c0_i32 = arith.constant 0 : i32
    %c0_i32_0 = arith.constant 0 : i32
    return %arg0, %c0_i32 : i32, i32
  }
  func.func @transform_1(%arg0: i32) -> (i32, i32) {
    %c0_i32 = arith.constant 0 : i32
    %c0_i32_0 = arith.constant 0 : i32
    %c0_i32_1 = arith.constant 0 : i32
    return %c0_i32, %c0_i32_0 : i32, i32
  }
  func.func @transform_2(%arg0: i32) -> (i32, i32) {
    %c0_i32 = arith.constant 0 : i32
    %c0_i32_0 = arith.constant 0 : i32
    %c0_i32_1 = arith.constant 0 : i32
    return %c0_i32, %c0_i32_0 : i32, i32
  }
  func.func @transform_3(%arg0: i32) -> (i32, i32) {
    %c0_i32 = arith.constant 0 : i32
    %c0_i32_0 = arith.constant 0 : i32
    return %arg0, %c0_i32 : i32, i32
  }
}

</mosaic_0001>

<bundles_post_ra>
// kernel: tpu_custom_call.1
= control target key start
LH: loop header
LB: loop body
LE: loop exit
PB: predicated region body
PF: predicated region fallthrough
CT: control target
= control target key end

     0   :  { %8 = vsyncpa [#allocation3], 0  ;;  %s1278_s0 = inlined_call_operand.hbm [shape: f32[512,128], index: 0, kind: input, shape index: {}]   ;;  %s1279_s1 = inlined_call_operand.hbm [shape: f32[128,128], index: 1, kind: input, shape index: {}]   ;;  %s1280_s2 = inlined_call_operand.vmem [shape: f32[1,128], index: 2, kind: input, shape index: {}]   ;;  %s1281_s3 = inlined_call_operand.hbm [shape: f32[512,128], index: 3, kind: output, shape index: {}]  }
   0x1   :  { %10 = vsyncpa [#allocation3 + $0x1], 0 }
   0x2   :  { %11 = vsyncpa [#allocation6], 0 }
   0x3   :  { %12 = vsyncpa [#allocation4], 0 }
   0x4   :  { %14 = vsyncpa [#allocation4 + $0x1], 0  ;;  %s988_s12 = smov 0   ;;  %s990_s13 = smov 0  }
   0x5   :  { %s992_s14 = smov 0   ;;  %s994_s15 = smov 0  }
   0x6 LB: > { %s1009_s16 = sadd.s32 4294967295, %s959_s15   ;;  %s583_s17 = sadd.s32 4294967294, %s959_s15   ;;  %s959_s15 = sphi %s994_s15, %s1300_s15   ;;  %s955_s14 = sphi %s992_s14, %s1299_s14   ;;  %s951_s13 = sphi %s990_s13, %s1298_s13   ;;  %s947_s12 = sphi %s988_s12, %s1297_s12  }
   0x7   : > { %p40_p0 = scmp.ne.s32.totalorder %s951_s13, %s947_s12  ;;  %p1282_p1 = scmp.eq.s32.totalorder %s1009_s16, 0 }
   0x8   : > { %p112_p3 = scmp.eq.s32.totalorder %s583_s17, 3  ;;  %p584_p5 = scmp.ge.s32.totalorder %s959_s15, 1 }
   0x9   : > { %p1018_p4 = por %p1282_p1, %p40_p0  ;;  %p119_p7 = scmp.lt.s32.totalorder %s959_s15, 5 }
   0xa   : > { %p1023_p6 = por %p112_p3, %p40_p0  ;;  %s961_s21 = smov [#allocation5]  }
   0xb   : > { %s1285_s18 = scalar_select %p1018_p4, 1, 0 }
   0xc   : > { %s1286_s19 = scalar_select %p1023_p6, 1, 0 }
   0xd   : > { %p1028_p8 = pnand %p584_p5, %p119_p7  ;;  %s131_s22 = sshll.u32 %s961_s21, 4  ;;  %s132_s22 = int_to_ptr.vmem [resolvable:$true] %s131_s22 }
   0xe   : > { %s1041_s24 = sadd.s32 1, %s959_s15   ;;  %s27_s25 = sadd.s32 1, %s955_s14 }
   0xf   : > { %s1287_s20 = scalar_select %p1028_p8, 1, 0 }
  0x10   : > { %p746_p9 = pneg %p1028_p8  ;;  %s24_s26 = ssub.s32 %s959_s15, %s1041_s24 }
  0x11   : > { %s831_s29 = scalar_lea.hbm %s1279_s1, 2048 }
  0x12   : > { %p1036_p10 = pnand %p746_p9, %p1282_p1  ;;  %p832_p11 = scmp.ne.s32.totalorder %s1279_s1, %s831_s29 }
  0x13   : > { %p838_p3 = scmp.lt.u32.totalorder %s831_s29, %s1279_s1 }
  0x14   : > { %p833_p12 = pneg %p1036_p10 }
  0x16   : > { %p834_p13 = pnand %p833_p12, %p832_p11 }
  0x18   : > { %p835_p0 = pneg %p834_p13 }
  0x1a   : > { %p840_p5 = pnand %p838_p3, %p835_p0 }
  0x1c   : > { %843 = shalt.err (!%p840_p5)
}
  0x1d   : > { %s844_s7 = scalar_lea.vmem %s132_s22, 2048  ;;  %p852_p2 = scmp.lt.s32.totalorder %s132_s22, %s132_s22 }
  0x1e   : > { %p845_p7 = scmp.ne.s32.totalorder %s132_s22, %s844_s7  ;;  %p853_p6 = scmp.lt.s32.totalorder %s844_s7, %s844_s7 }
  0x20   : > { %p847_p9 = pnand %p845_p7, %p833_p12  ;;  %p854_p4 = por %p853_p6, %p852_p2 }
  0x22   : > { %p848_p1 = pneg %p847_p9 }
  0x24   : > { %p855_p8 = pnand %p854_p4, %p848_p1 }
  0x26   : > { %858 = shalt.err (!%p855_p8)
}
  0x27   : > { %s962_s8 = smov 128   ;;  %s963_s9 = smov 8  }
  0x28   : > { %749 = dma.hbm_to_vmem [thread:$0]  (!%p1036_p10), %s1279_s1, 2048, %s132_s22, [#allocation6], %s962_s8, %s962_s8, %s963_s9  }
  0x29   : > { %p25_p1 = scmp.eq.s32.totalorder %s24_s26, 0  ;;  %p34_p2 = scmp.ne.s32.totalorder %s955_s14, %s951_s13 }
  0x2a   : > { %p35_p4 = scmp.eq.s32.totalorder %s959_s15, 0  ;;  %p759_p6 = scmp.lt.s32.totalorder %s959_s15, 4 }
  0x2b   : > { %s1070_s17 = scalar_select %p25_p1, %s955_s14, %s27_s25  }
  0x2c   : > { %p36_p8 = por %p35_p4, %p34_p2  ;;  %p1289_p11 = scmp.eq.s32.totalorder %s1009_s16, 3 }
  0x2d   : > { %s148_s23 = sand.u32 1, %s955_s14   ;;  %s600_s27 = sshll.u32 %s959_s15, 11 }
  0x2e   : > { %p1074_p12 = por %p1289_p11, %p34_p2  ;;  %s587_s28 = sshll.u32 %s148_s23, 7 }
  0x2f   : > { %s1083_s4 = scalar_lea.hbm %s1278_s0, %s600_s27  ;;  %s152_s22 = scalar_lea.vmem [#allocation2], %s587_s28 }
  0x30   : > { %s159_s25 = sshll.u32 %s152_s22, 4  ;;  %p1085_p10 = pnand %p759_p6, %p36_p8  ;;  %s1089_s25 = int_to_ptr.vmem [resolvable:$true] %s159_s25 }
  0x31   : > { %s1091_s5 = scalar_lea.sflag [#allocation3], %s148_s23  ;;  %s859_s6 = scalar_lea.hbm %s1083_s4, 2048 }
  0x32   : > { %p860_p13 = scmp.ne.s32.totalorder %s1083_s4, %s859_s6  ;;  %p861_p0 = pneg %p1085_p10 }
  0x33   : > { %s864_s11 = scalar_lea.hbm %s1278_s0, 8192  ;;  %p865_p7 = scmp.lt.u32.totalorder %s1083_s4, %s1278_s0 }
  0x34   : > { %p862_p3 = pnand %p861_p0, %p860_p13  ;;  %p866_p9 = scmp.lt.u32.totalorder %s864_s11, %s859_s6 }
  0x35   : > { %p868_p2 = scmp.lt.u32.totalorder %s859_s6, %s1083_s4 }
  0x36   : > { %p863_p5 = pneg %p862_p3  ;;  %p867_p1 = por %p866_p9, %p865_p7 }
  0x38   : > { %p869_p4 = por %p868_p2, %p867_p1 }
  0x3a   : > { %p870_p6 = pnand %p869_p4, %p863_p5 }
  0x3c   : > { %873 = shalt.err (!%p870_p6)
}
  0x3d   : > { %s874_s23 = scalar_lea.vmem %s1089_s25, 2048  ;;  %s964_s29 = smov [#allocation2]  }
  0x3e   : > { %p875_p8 = scmp.ne.s32.totalorder %s1089_s25, %s874_s23  ;;  %s879_s30 = sshll.u32 %s964_s29, 4  ;;  %s880_s30 = int_to_ptr.vmem [resolvable:$false] %s879_s30 }
  0x3f   : > { %s881_s22 = scalar_lea.vmem %s880_s30, 4096  ;;  %p882_p3 = scmp.lt.s32.totalorder %s1089_s25, %s880_s30 }
  0x40   : > { %p877_p11 = pnand %p875_p8, %p861_p0  ;;  %p883_p7 = scmp.lt.s32.totalorder %s881_s22, %s874_s23 }
  0x42   : > { %p878_p13 = pneg %p877_p11  ;;  %p884_p9 = por %p883_p7, %p882_p3 }
  0x44   : > { %p885_p1 = pnand %p884_p9, %p878_p13 }
  0x46   : > { %888 = shalt.err (!%p885_p1)
}
  0x47   : > { %753 = dma.hbm_to_vmem [thread:$0]  (!%p1085_p10), %s1083_s4, 2048, %s1089_s25, %s1091_s5, %s962_s8, %s962_s8, %s963_s9  }
  0x48   : > { %p1292_p0 = scmp.ne.s32.totalorder %s1287_s20, 0 }
  0x49   : > { %s1125_s6 = sand.u32 (!%p1292_p0), 1, %s951_s13   ;;  %p1293_p5 = scmp.ne.s32.totalorder (!%p1292_p0), %s1285_s18, 0 }
  0x4a   : > { %171 = sbr.rel (%p1292_p0) target bundleno = 381 (0x17d), region = 32  ;;  %s591_s7 = sshll.u32 (!%p1292_p0), %s1125_s6, 7 }
  0x4b   : > { %s174_s10 = scalar_lea.sflag (!%p1292_p0), [#allocation3], %s1125_s6  ;;  %s1131_s26 = scalar_lea.vmem (!%p1292_p0), [#allocation2], %s591_s7 }
  0x51   : > { %934 = dma.done.wait (%p1293_p5), %s174_s10, 2048  }
  0x52   : > { %936 = vsyncadd (%p1293_p5), %s174_s10, 4294965248  ;;  %p1294_p10 = scmp.eq.s32.totalorder %s1009_s16, 0 }
  0x54   : > { %938 = dma.done.wait (%p1294_p10), [#allocation6], 2048   ;;  %p1295_p2 = pmov %p1294_p10 }
  0x55   : > { %v222_v0 = vld [vmem:[#allocation5] sm:$0xff]  ;;  %v223_v1 = vld [vmem:[#allocation5 + $0x8] sm:$0xff]  ;;  %v224_v2 = vld [vmem:[#allocation5 + $0x10] sm:$0xff]  ;;  %s1197_s8 = scalar_lea.vmem [#allocation7], %s591_s7  ;;  %s601_s9 = sshll.u32 %s1009_s16, 11 }
  0x56   : > { %940 = vsyncadd (%p1295_p2), [#allocation6], 4294965248  ;;  %v690_v3 = vpack.c.bf16 %v223_v1, %v222_v0  ;;  %v225_v4 = vld [vmem:[#allocation5 + $0x18] sm:$0xff]  ;;  %v226_v6 = vld [vmem:[#allocation5 + $0x20] sm:$0xff]  ;;  %s500_s4 = sshll.u32 %s1197_s8, 4  ;;  %s1231_s16 = scalar_lea.hbm %s1281_s3, %s601_s9  ;;  %s1233_s4 = int_to_ptr.vmem [resolvable:$true] %s500_s4 }
  0x57   : > { %v694_v5 = vpack.c.bf16 %v225_v4, %v224_v2  ;;  %v227_v7 = vld [vmem:[#allocation5 + $0x28] sm:$0xff]  ;;  %v206_v9 = vld [vmem:[%s1131_s26] sm:$0xff]  ;;  %v228_v11 = vld [vmem:[#allocation5 + $0x30] sm:$0xff]  ;;  %s487_s11 = scalar_lea.sflag [#allocation4], %s1125_s6  ;;  %s889_s27 = scalar_lea.vmem %s1233_s4, 2048 }
  0x58   : > { %691 = vmatprep.subr.bf16.mxu0 %v690_v3  ;;  %722 = vmatprep.subr.bf16.mxu1 %v690_v3  ;;  %v698_v8 = vpack.c.bf16 %v227_v7, %v226_v6  ;;  %v214_v10 = vld [vmem:[%s1131_s26 + $0x40] sm:$0xff]  ;;  %v229_v12 = vld [vmem:[#allocation5 + $0x38] sm:$0xff]  ;;  %v231_v15 = vld [vmem:[#allocation5 + $0x48] sm:$0xff]  ;;  %p890_p4 = scmp.ne.s32.totalorder %s1233_s4, %s889_s27  ;;  %s965_s28 = smov [#allocation7]  }
  0x59   : > { %693 = vmatpush3.bf16.msra.mxu0 %v690_v3  ;;  %730 = vmatpush3.bf16.msra.mxu1 %v690_v3  ;;  %v702_v13 = vpack.c.bf16 %v229_v12, %v228_v11  ;;  %v230_v14 = vld [vmem:[#allocation5 + $0x40] sm:$0xff]  ;;  %v232_v17 = vld [vmem:[#allocation5 + $0x50] sm:$0xff]  ;;  %v233_v18 = vld [vmem:[#allocation5 + $0x58] sm:$0xff]  ;;  %s893_s23 = sshll.u32 %s965_s28, 4  ;;  %s894_s23 = int_to_ptr.vmem [resolvable:$false] %s893_s23 }
  0x5a   : > { %695 = vmatprep.subr.bf16.mxu0 %v694_v5  ;;  %723 = vmatprep.subr.bf16.mxu1 %v694_v5  ;;  %v706_v16 = vpack.c.bf16 %v231_v15, %v230_v14  ;;  %v710_v19 = vpack.c.bf16 %v233_v18, %v232_v17  ;;  %v234_v20 = vld [vmem:[#allocation5 + $0x60] sm:$0xff]  ;;  %v235_v21 = vld [vmem:[#allocation5 + $0x68] sm:$0xff]  ;;  %v236_v23 = vld [vmem:[#allocation5 + $0x70] sm:$0xff]  ;;  %p891_p6 = pnand %p890_p4, %p1074_p12  ;;  %s895_s29 = scalar_lea.vmem %s894_s23, 4096 }
  0x5b   : > { %666 = vmatprep.mubr.f32.mxu0 %v206_v9  ;;  %678 = vmatprep.mubr.f32.mxu1 %v214_v10  ;;  %v714_v22 = vpack.c.bf16 %v235_v21, %v234_v20  ;;  %v237_v24 = vld [vmem:[#allocation5 + $0x78] sm:$0xff]  ;;  %v207_v26 = vld [vmem:[%s1131_s26 + $0x8] sm:$0xff]  ;;  %v208_v28 = vld [vmem:[%s1131_s26 + $0x10] sm:$0xff]  ;;  %p896_p11 = scmp.lt.s32.totalorder %s1233_s4, %s894_s23  ;;  %p897_p13 = scmp.lt.s32.totalorder %s895_s29, %s889_s27 }
  0x5c   : > { %v718_v25 = vpack.c.bf16 %v237_v24, %v236_v23  ;;  %v215_v27 = vld [vmem:[%s1131_s26 + $0x48] sm:$0xff]  ;;  %v216_v29 = vld [vmem:[%s1131_s26 + $0x50] sm:$0xff]  ;;  %v209_v30 = vld [vmem:[%s1131_s26 + $0x18] sm:$0xff]  ;;  %p892_p8 = pneg %p891_p6 }
  0x5d   : > { %697 = vmatpush3.bf16.msra.mxu0 %v694_v5  ;;  %731 = vmatpush3.bf16.msra.mxu1 %v694_v5  ;;  %v217_v31 = vld [vmem:[%s1131_s26 + $0x58] sm:$0xff]  ;;  %v210_v32 = vld [vmem:[%s1131_s26 + $0x20] sm:$0xff]  ;;  %v211_v34 = vld [vmem:[%s1131_s26 + $0x28] sm:$0xff]  ;;  %p898_p3 = por %p897_p13, %p896_p11 }
  0x5e   : > { %699 = vmatprep.subr.bf16.mxu0 %v698_v8  ;;  %724 = vmatprep.subr.bf16.mxu1 %v698_v8  ;;  %v218_v33 = vld [vmem:[%s1131_s26 + $0x60] sm:$0xff]  ;;  %v219_v35 = vld [vmem:[%s1131_s26 + $0x68] sm:$0xff]  ;;  %v212_v36 = vld [vmem:[%s1131_s26 + $0x30] sm:$0xff] }
  0x5f   : > { %v220_v37 = vld [vmem:[%s1131_s26 + $0x70] sm:$0xff]  ;;  %v213_v38 = vld [vmem:[%s1131_s26 + $0x38] sm:$0xff]  ;;  %v594_v40 = vld [vmem:[%s1280_s2] ss:$0 sm:$0xff]  ;;  %p899_p7 = pnand %p898_p3, %p892_p8 }
  0x60   : > { %v221_v39 = vld [vmem:[%s1131_s26 + $0x78] sm:$0xff] }
  0x61   : > { %701 = vmatpush3.bf16.msra.mxu0 %v698_v8  ;;  %732 = vmatpush3.bf16.msra.mxu1 %v698_v8 }
  0x62   : > { %703 = vmatprep.subr.bf16.mxu0 %v702_v13  ;;  %725 = vmatprep.subr.bf16.mxu1 %v702_v13 }
  0x65   : > { %705 = vmatpush3.bf16.msra.mxu0 %v702_v13  ;;  %733 = vmatpush3.bf16.msra.mxu1 %v702_v13 }
  0x66   : > { %707 = vmatprep.subr.bf16.mxu0 %v706_v16  ;;  %726 = vmatprep.subr.bf16.mxu1 %v706_v16 }
  0x69   : > { %709 = vmatpush3.bf16.msra.mxu0 %v706_v16  ;;  %734 = vmatpush3.bf16.msra.mxu1 %v706_v16 }
  0x6a   : > { %711 = vmatprep.subr.bf16.mxu0 %v710_v19  ;;  %727 = vmatprep.subr.bf16.mxu1 %v710_v19 }
  0x6d   : > { %713 = vmatpush3.bf16.msra.mxu0 %v710_v19  ;;  %735 = vmatpush3.bf16.msra.mxu1 %v710_v19 }
  0x6e   : > { %715 = vmatprep.subr.bf16.mxu0 %v714_v22  ;;  %728 = vmatprep.subr.bf16.mxu1 %v714_v22 }
  0x71   : > { %717 = vmatpush3.bf16.msra.mxu0 %v714_v22  ;;  %736 = vmatpush3.bf16.msra.mxu1 %v714_v22 }
  0x72   : > { %719 = vmatprep.subr.bf16.mxu0 %v718_v25  ;;  %729 = vmatprep.subr.bf16.mxu1 %v718_v25 }
  0x75   : > { %721 = vmatpush3.bf16.msra.mxu0 %v718_v25  ;;  %737 = vmatpush3.bf16.msra.mxu1 %v718_v25 }
  0x78   : > { %667 = vmatmul.mubr.f32.vlgmr.msra.gmra.mrb[0].mxu0 %v207_v26  ;;  %679 = vmatmul.mubr.f32.vlgmr.msra.gmra.mrb[0].mxu1 %v215_v27 }
  0x79   : > { %669 = vmatprep.mubr.f32.mxu0 %v208_v28  ;;  %681 = vmatprep.mubr.f32.mxu1 %v216_v29 }
  0x7c   : > { %670 = vmatmul.mubr.f32.gmra.mrb[2].mxu0 %v209_v30  ;;  %682 = vmatmul.mubr.f32.gmra.mrb[2].mxu1 %v217_v31 }
  0x7d   : > { %672 = vmatprep.mubr.f32.mxu0 %v210_v32  ;;  %684 = vmatprep.mubr.f32.mxu1 %v218_v33 }
  0x80   : > { %673 = vmatmul.mubr.f32.gmra.mrb[4].mxu0 %v211_v34  ;;  %685 = vmatmul.mubr.f32.gmra.mrb[4].mxu1 %v219_v35 }
  0x81   : > { %675 = vmatprep.mubr.f32.mxu0 %v212_v36  ;;  %687 = vmatprep.mubr.f32.mxu1 %v220_v37 }
  0x84   : > { %676 = vmatmul.mubr.f32.gmra.mrb[6].mxu0 %v213_v38  ;;  %688 = vmatmul.mubr.f32.gmra.mrb[6].mxu1 %v221_v39 }
 0x14b   : > { %v668_v41 = vpop.f32.mrb[0].mxu0  ;;  %v680_v42 = vpop.f32.mrb[0].mxu1 }
 0x14c   : > { %v317_v43 = vadd.f32 %v668_v41, %v594_v40  ;;  %v357_v44 = vadd.f32 %v680_v42, %v594_v40  ;;  %v311_v45 = vpop.f32.mrb[1].mxu0  ;;  %v351_v46 = vpop.f32.mrb[1].mxu1 }
 0x14d   : > { %v312_v47 = vadd.f32 %v594_v40, %v311_v45  ;;  %v352_v48 = vadd.f32 %v594_v40, %v351_v46 }
 0x14e   : > { %v407_v49 = vmul.f32 0.70710677, %v317_v43  ;;  %v415_v50 = vmul.f32 0.70710677, %v357_v44  ;;  %v391_v15 = vmul.f32 0.5, %v317_v43  ;;  %v399_v20 = vmul.f32 0.5, %v357_v44 }
 0x14f   : > { %v406_v51 = vmul.f32 0.70710677, %v312_v47  ;;  %v414_v52 = vmul.f32 0.70710677, %v352_v48  ;;  %v671_v53 = vpop.f32.mrb[2].mxu0  ;;  %v683_v54 = vpop.f32.mrb[2].mxu1 }
 0x150   : > { %799 = verf.f32 %v407_v49  ;;  %v1160_v55 = vadd.f32 %v671_v53, %v594_v40  ;;  %v1162_v56 = vadd.f32 %v683_v54, %v594_v40  ;;  %v321_v57 = vpop.f32.mrb[3].mxu0  ;;  %v361_v58 = vpop.f32.mrb[3].mxu1  ;;  %v390_v29 = vmul.f32 0.5, %v312_v47 }
 0x151   : > { %801 = verf.f32 %v415_v50  ;;  %v1164_v59 = vadd.f32 %v594_v40, %v321_v57  ;;  %v1166_v60 = vadd.f32 %v594_v40, %v361_v58  ;;  %v398_v34 = vmul.f32 0.5, %v352_v48 }
 0x152   : > { %803 = verf.f32 %v406_v51  ;;  %v409_v61 = vmul.f32 0.70710677, %v1160_v55  ;;  %v417_v0 = vmul.f32 0.70710677, %v1162_v56  ;;  %v393_v43 = vmul.f32 0.5, %v1160_v55 }
 0x153   : > { %805 = verf.f32 %v414_v52  ;;  %v674_v62 = vpop.f32.mrb[4].mxu0  ;;  %v686_v63 = vpop.f32.mrb[4].mxu1  ;;  %v408_v1 = vmul.f32 0.70710677, %v1164_v59  ;;  %v416_v2 = vmul.f32 0.70710677, %v1166_v60 }
 0x154   : > { %807 = verf.f32 %v409_v61  ;;  %v1172_v3 = vadd.f32 %v674_v62, %v594_v40  ;;  %v1174_v4 = vadd.f32 %v686_v63, %v594_v40  ;;  %v331_v5 = vpop.f32.mrb[5].mxu0  ;;  %v371_v6 = vpop.f32.mrb[5].mxu1  ;;  %v401_v46 = vmul.f32 0.5, %v1162_v56 }
 0x155   : > { %809 = verf.f32 %v417_v0  ;;  %v1176_v7 = vadd.f32 %v594_v40, %v331_v5  ;;  %v1178_v8 = vadd.f32 %v594_v40, %v371_v6  ;;  %v392_v50 = vmul.f32 0.5, %v1164_v59 }
 0x156   : > { %811 = verf.f32 %v408_v1  ;;  %v411_v9 = vmul.f32 0.70710677, %v1172_v3  ;;  %v419_v12 = vmul.f32 0.70710677, %v1174_v4  ;;  %v400_v54 = vmul.f32 0.5, %v1166_v60 }
 0x157   : > { %v677_v10 = vpop.f32.mrb[6].mxu0  ;;  %v689_v11 = vpop.f32.mrb[6].mxu1  ;;  %813 = verf.f32 %v416_v2  ;;  %v410_v13 = vmul.f32 0.70710677, %v1176_v7  ;;  %v418_v16 = vmul.f32 0.70710677, %v1178_v8 }
 0x158   : > { %v341_v14 = vpop.f32.mrb[7].mxu0  ;;  %815 = verf.f32 %v411_v9  ;;  %v1184_v17 = vadd.f32 %v677_v10, %v594_v40  ;;  %v381_v18 = vpop.f32.mrb[7].mxu1  ;;  %v1186_v21 = vadd.f32 %v689_v11, %v594_v40  ;;  %v395_v56 = vmul.f32 0.5, %v1172_v3 }
 0x159   : > { %817 = verf.f32 %v419_v12  ;;  %v1188_v22 = vadd.f32 %v594_v40, %v341_v14  ;;  %v1191_v26 = vadd.f32 %v594_v40, %v381_v18  ;;  %v403_v59 = vmul.f32 0.5, %v1174_v4 }
 0x15a   : > { %v800_v19 = vpop.eup %799  ;;  %819 = verf.f32 %v410_v13  ;;  %v413_v25 = vmul.f32 0.70710677, %v1184_v17  ;;  %v421_v30 = vmul.f32 0.70710677, %v1186_v21  ;;  %v394_v60 = vmul.f32 0.5, %v1176_v7 }
 0x15b   : > { %v802_v23 = vpop.eup %801  ;;  %v439_v24 = vadd.f32 1.0, %v800_v19  ;;  %821 = verf.f32 %v418_v16  ;;  %v412_v37 = vmul.f32 0.70710677, %v1188_v22  ;;  %v420_v40 = vmul.f32 0.70710677, %v1191_v26 }
 0x15c   : > { %v804_v27 = vpop.eup %803  ;;  %v447_v28 = vadd.f32 1.0, %v802_v23  ;;  %823 = verf.f32 %v413_v25  ;;  %v402_v9 = vmul.f32 0.5, %v1178_v8  ;;  %v397_v12 = vmul.f32 0.5, %v1184_v17 }
 0x15d   : > { %v806_v31 = vpop.eup %805  ;;  %v455_v32 = vmul.f32 %v439_v24, %v391_v15  ;;  %v438_v33 = vadd.f32 1.0, %v804_v27  ;;  %825 = verf.f32 %v421_v30  ;;  %v405_v14 = vmul.f32 0.5, %v1186_v21 }
 0x15e   : > { %v463_v35 = vmul.f32 %v447_v28, %v399_v20  ;;  %v446_v36 = vadd.f32 1.0, %v806_v31  ;;  %v808_v38 = vpop.eup %807  ;;  %827 = verf.f32 %v412_v37  ;;  %v396_v17 = vmul.f32 0.5, %v1188_v22 }
 0x15f   : > { %471 = vst [vmem:[%s1197_s8 + $0x8] sm:$0xff] %v455_v32  ;;  %v454_v39 = vmul.f32 %v438_v33, %v390_v29  ;;  %v810_v41 = vpop.eup %809  ;;  %v441_v44 = vadd.f32 1.0, %v808_v38  ;;  %829 = verf.f32 %v420_v40  ;;  %v404_v23 = vmul.f32 0.5, %v1191_v26 }
 0x160   : > { %479 = vst [vmem:[%s1197_s8 + $0x48] sm:$0xff] %v463_v35  ;;  %v462_v42 = vmul.f32 %v446_v36, %v398_v34  ;;  %v812_v45 = vpop.eup %811  ;;  %v449_v47 = vadd.f32 1.0, %v810_v41 }
 0x161   : > { %470 = vst [vmem:[%s1197_s8] sm:$0xff] %v454_v39  ;;  %v814_v48 = vpop.eup %813  ;;  %v457_v49 = vmul.f32 %v441_v44, %v393_v43  ;;  %v440_v51 = vadd.f32 1.0, %v812_v45 }
 0x162   : > { %478 = vst [vmem:[%s1197_s8 + $0x40] sm:$0xff] %v462_v42  ;;  %v816_v52 = vpop.eup %815  ;;  %v465_v53 = vmul.f32 %v449_v47, %v401_v46  ;;  %v448_v55 = vadd.f32 1.0, %v814_v48 }
 0x163   : > { %v818_v57 = vpop.eup %817  ;;  %473 = vst [vmem:[%s1197_s8 + $0x18] sm:$0xff] %v457_v49  ;;  %v456_v58 = vmul.f32 %v440_v51, %v392_v50  ;;  %v443_v61 = vadd.f32 1.0, %v816_v52 }
 0x164   : > { %v820_v62 = vpop.eup %819  ;;  %481 = vst [vmem:[%s1197_s8 + $0x58] sm:$0xff] %v465_v53  ;;  %v464_v63 = vmul.f32 %v448_v55, %v400_v54  ;;  %v451_v0 = vadd.f32 1.0, %v818_v57 }
 0x165   : > { %v822_v1 = vpop.eup %821  ;;  %472 = vst [vmem:[%s1197_s8 + $0x10] sm:$0xff] %v456_v58  ;;  %v459_v2 = vmul.f32 %v443_v61, %v395_v56  ;;  %v442_v5 = vadd.f32 1.0, %v820_v62 }
 0x166   : > { %v824_v6 = vpop.eup %823  ;;  %480 = vst [vmem:[%s1197_s8 + $0x50] sm:$0xff] %v464_v63  ;;  %v467_v3 = vmul.f32 %v451_v0, %v403_v59  ;;  %v450_v10 = vadd.f32 1.0, %v822_v1 }
 0x167   : > { %v826_v11 = vpop.eup %825  ;;  %475 = vst [vmem:[%s1197_s8 + $0x28] sm:$0xff] %v459_v2  ;;  %v458_v4 = vmul.f32 %v442_v5, %v394_v60  ;;  %v445_v13 = vadd.f32 1.0, %v824_v6 }
 0x168   : > { %483 = vst [vmem:[%s1197_s8 + $0x68] sm:$0xff] %v467_v3  ;;  %v466_v7 = vmul.f32 %v450_v10, %v402_v9  ;;  %v453_v15 = vadd.f32 1.0, %v826_v11  ;;  %v828_v16 = vpop.eup %827 }
 0x169   : > { %474 = vst [vmem:[%s1197_s8 + $0x20] sm:$0xff] %v458_v4  ;;  %v461_v18 = vmul.f32 %v445_v13, %v397_v12  ;;  %v830_v8 = vpop.eup %829  ;;  %v444_v20 = vadd.f32 1.0, %v828_v16 }
 0x16a   : > { %482 = vst [vmem:[%s1197_s8 + $0x60] sm:$0xff] %v466_v7  ;;  %v469_v19 = vmul.f32 %v453_v15, %v405_v14  ;;  %v452_v21 = vadd.f32 1.0, %v830_v8 }
 0x16b   : > { %477 = vst [vmem:[%s1197_s8 + $0x38] sm:$0xff] %v461_v18  ;;  %v460_v24 = vmul.f32 %v444_v20, %v396_v17 }
 0x16c   : > { %485 = vst [vmem:[%s1197_s8 + $0x78] sm:$0xff] %v469_v19  ;;  %v468_v25 = vmul.f32 %v452_v21, %v404_v23 }
 0x16d   : > { %476 = vst [vmem:[%s1197_s8 + $0x30] sm:$0xff] %v460_v24 }
 0x16e   : > { %484 = vst [vmem:[%s1197_s8 + $0x70] sm:$0xff] %v468_v25 }
 0x16f   : > { %902 = shalt.err (!%p899_p7)
}
 0x170   : > { %s903_s30 = scalar_lea.hbm %s1231_s16, 2048  ;;  %s907_s10 = scalar_lea.hbm %s1281_s3, 8192 }
 0x171   : > { %p904_p9 = scmp.ne.s32.totalorder %s1231_s16, %s903_s30  ;;  %p908_p5 = scmp.lt.u32.totalorder %s1231_s16, %s1281_s3 }
 0x172   : > { %p909_p10 = scmp.lt.u32.totalorder %s907_s10, %s903_s30  ;;  %p911_p4 = scmp.lt.u32.totalorder %s903_s30, %s1231_s16 }
 0x173   : > { %p905_p1 = pnand %p904_p9, %p1074_p12 }
 0x174   : > { %p910_p2 = por %p909_p10, %p908_p5 }
 0x175   : > { %p906_p0 = pneg %p905_p1 }
 0x176   : > { %p912_p6 = por %p911_p4, %p910_p2 }
 0x178   : > { %p913_p8 = pnand %p912_p6, %p906_p0 }
 0x17a   : > { %916 = shalt.err (!%p913_p8)
}
 0x17b   : > { %s966_s20 = smov 128   ;;  %s967_s8 = smov 8  }
 0x17c   : > { %744 = dma.vmem_to_hbm [thread:$0]  (%p1074_p12), %s1233_s4, 2048, %s1231_s16, %s487_s11, %s966_s20, %s966_s20, %s967_s8  }
 0x17d PF: > { %p761_p11 = scmp.ge.s32.totalorder %s959_s15, 2  ;;  %s515_s9 = sand.u32 1, %s947_s12  }
 0x17e   : > { %p1296_p13 = scmp.ne.s32.totalorder %s1286_s19, 0  ;;  %s516_s25 = scalar_lea.sflag [#allocation4], %s515_s9 }
 0x180   : > { %p755_p3 = pnand %p761_p11, %p1296_p13 }
 0x182   : > { %942 = dma.done.wait (!%p755_p3), %s516_s25, 2048  }
 0x183   : > { %944 = vsyncadd (!%p755_p3), %s516_s25, 4294965248  ;;  %p17_p7 = scmp.ge.s32.totalorder %s1041_s24, 6   ;;  %s1297_s12 = smov %s951_s13 }
 0x184   : > { %s1298_s13 = smov %s955_s14  ;;  %s1299_s14 = smov %s1070_s17 }
 0x185   : > { %s1300_s15 = smov %s1041_s24  ;;  %19 = sbr.rel (!%p17_p7) target bundleno = 6 (0x6), region = 81 }
 0x18c   :  { %521 = vsyncpa [#allocation3], 1 }
 0x18d   :  { %523 = vsyncpa [#allocation3 + $0x1], 1 }
 0x18e   :  { %524 = vsyncpa [#allocation6], 1 }
 0x18f   :  { %525 = vsyncpa [#allocation4], 1 }
 0x190   :  { %527 = vsyncpa [#allocation4 + $0x1], 1 }

</bundles_post_ra>
